<compile_context>
chip_gen: v5e
topology: v5e:2x2
jax: 0.10.0
libtpu: 0.0.40
codegen_flags: <defaults>
</compile_context>

<pallas_src>
import functools
import math

import numpy as np
import jax
import jax.numpy as jnp
from jax.experimental import pallas as pl
from jax.experimental.pallas import tpu as pltpu


def _round_up(v, m):
    return (v + m - 1) // m * m


def _encoder_kernel(x_ref, *refs, relu_flags, matmul_dtype):
    """Fused MLP over one batch tile.  refs = (w0, b0, w1, b1, ..., wN, bN, out_ref)."""
    o_ref = refs[-1]
    wb_refs = refs[:-1]
    h = x_ref[...]                                   # (bm, F) bf16 — already MXU dtype
    for li, do_relu in enumerate(relu_flags):
        w = wb_refs[2 * li][...]                     # (in, out)  bf16 (MXU operand)
        b = wb_refs[2 * li + 1][...]                 # (1, out)   f32
        lhs = h if h.dtype == matmul_dtype else h.astype(matmul_dtype)
        h = jnp.dot(lhs, w, preferred_element_type=jnp.float32) + b   # f32 epilogue
        if do_relu:
            h = jnp.maximum(h, 0.0)                  # f32 (safe on v5e's f32-only VPU)
    o_ref[...] = h.astype(o_ref.dtype)               # lane-dense (bm, Lp) store


def encoder_forward(x, weights, biases, *, block_m=512,
                    matmul_dtype=jnp.bfloat16, out_dtype=jnp.float32):
    """Encoder.forward (non-variational).

    weights[i]: (out_i, in_i) torch nn.Linear layout; biases[i]: (out_i,).
    Returns (B, latent_dims) float32.
    """
    n_layers = len(weights)
    assert n_layers >= 1
    # No activation after the first Linear, ReLU after middle hidden Linears only.
    relu_flags = (tuple([False] + [True] * (n_layers - 2) + [False])
                  if n_layers >= 2 else (False,))

    B, F = x.shape
    latent = weights[-1].shape[0]
    # Lane-dense output store.  (On v6e/v7x, hidden/latent widths that are multiples
    # of 256 would fill the 256x256 MXU better — that is a model-config decision.)
    Lp = _round_up(latent, 128)
    out_itemsize = np.dtype(out_dtype).itemsize
    w_itemsize = np.dtype(matmul_dtype).itemsize

    # ---- batch tiling -------------------------------------------------------------
    # Tile rows (sublane multiple of 8); cap at ceil(B/2) so large batches give the
    # parallel grid axis >=2 steps (one per v7x TensorCore).
    if B <= 8:
        bm = B                                        # single block == full array dim
    else:
        bm = min(block_m, _round_up(pl.cdiv(B, 2), 8))

    dims = [F] + [w.shape[0] for w in weights]        # layer widths
    w_bytes = sum(int(w.size) for w in weights) * w_itemsize
    b_bytes = sum(int(b.size) for b in biases) * 4

    def footprint(tile):
        f = 2 * tile * F * 2                          # x tile, bf16, double-buffered
        f += 2 * tile * Lp * out_itemsize             # out tile, double-buffered
        f += 2 * (w_bytes + b_bytes)                  # resident weights (dbl-buffered)
        f += 3 * tile * max(dims + [Lp]) * 4          # live f32 intermediates headroom
        return f

    budget = 48 << 20                                 # leave headroom on v7x's 64 MiB
    while bm > 8 and footprint(bm) > budget:
        bm = _round_up(bm // 2, 8)

    Bp = _round_up(B, bm)
    grid_m = Bp // bm

    # ---- x: one fused cast(+pad); no separate zero-init / scatter pass -------------
    x_b = x.astype(matmul_dtype)
    if Bp != B:
        x_b = jnp.pad(x_b, ((0, Bp - B), (0, 0)))

    args = [x_b]
    in_specs = [pl.BlockSpec((bm, F), lambda i: (i, 0))]
    for li in range(n_layers):
        w = weights[li].T.astype(matmul_dtype)        # (in, out)
        b = biases[li].reshape(1, -1).astype(jnp.float32)
        if li == n_layers - 1 and Lp != latent:
            w = jnp.zeros((w.shape[0], Lp), matmul_dtype).at[:, :latent].set(w)
            b = jnp.zeros((1, Lp), jnp.float32).at[:, :latent].set(b)
        args += [w, b]
        # Grid-invariant blocks: weights/biases stay resident in VMEM across the grid.
        in_specs += [
            pl.BlockSpec(w.shape, lambda i: (0, 0)),
            pl.BlockSpec(b.shape, lambda i: (0, 0)),
        ]

    flops = 2 * Bp * sum(int(weights[li].shape[0]) * int(weights[li].shape[1])
                         for li in range(n_layers))
    bytes_accessed = int(x_b.size) * 2 + w_bytes + b_bytes + Bp * Lp * out_itemsize

    kernel = functools.partial(_encoder_kernel,
                               relu_flags=relu_flags, matmul_dtype=matmul_dtype)
    out_p = pl.pallas_call(
        kernel,
        out_shape=jax.ShapeDtypeStruct((Bp, Lp), out_dtype),
        grid_spec=pltpu.PrefetchScalarGridSpec(
            num_scalar_prefetch=0,
            grid=(grid_m,),
            in_specs=in_specs,
            out_specs=pl.BlockSpec((bm, Lp), lambda i: (i, 0)),
            scratch_shapes=[],
        ),
        compiler_params=pltpu.CompilerParams(
            dimension_semantics=("parallel",),
            vmem_limit_bytes=int(min(max(footprint(bm) + (8 << 20), 32 << 20),
                                     64 << 20))),
        cost_estimate=pl.CostEstimate(flops=flops, transcendentals=0,
                                      bytes_accessed=bytes_accessed),
    )(*args)

    out = out_p[:B, :latent]
    return out if out_dtype == jnp.float32 else out.astype(jnp.float32)


def init_params(key, feature_size, layer_sizes, latent_dims):
    """Torch-default-like uniform(-1/sqrt(fan_in), 1/sqrt(fan_in)) init."""
    dims = [feature_size] + list(layer_sizes) + [latent_dims]
    weights, biases = [], []
    ks = jax.random.split(key, 2 * (len(dims) - 1))
    for li in range(len(dims) - 1):
        bound = 1.0 / math.sqrt(dims[li])
        weights.append(jax.random.uniform(
            ks[2 * li], (dims[li + 1], dims[li]), jnp.float32, -bound, bound))
        biases.append(jax.random.uniform(
            ks[2 * li + 1], (dims[li + 1],), jnp.float32, -bound, bound))
    return weights, biases


if __name__ == "__main__":
    B, FEATURE, LATENT = 2, 784, 10     # module defaults: feature_size=784, layer_sizes=[128]
    LAYER_SIZES = [128]

    key = jax.random.PRNGKey(0)
    kx, kp = jax.random.split(key)
    x = jax.random.normal(kx, (B, FEATURE), dtype=jnp.float32)
    weights, biases = init_params(kp, FEATURE, LAYER_SIZES, LATENT)

    fwd = jax.jit(encoder_forward)
    out = jax.block_until_ready(fwd(x, weights, biases))

    assert out.shape == (B, LATENT), out.shape
    assert bool(jnp.all(jnp.isfinite(out)))

    # Pure-JAX reference with the same bf16-at-matmul-boundary quantization.
    n_layers = len(weights)
    relu_flags = [False] + [True] * (n_layers - 2) + [False]
    h = x
    for li in range(n_layers):
        h = jnp.dot(h.astype(jnp.bfloat16), weights[li].T.astype(jnp.bfloat16),
                    preferred_element_type=jnp.float32) + biases[li]
        if relu_flags[li]:
            h = jnp.maximum(h, 0.0)
    assert bool(jnp.allclose(out, h, rtol=1e-2, atol=1e-2)), "mismatch vs reference"

    print("KERNEL_OK")
</pallas_src>

<mosaic_0001>
module attributes {stable_mosaic.version = 11 : i64} {
  func.func @_encoder_kernel(%arg0: i32, %arg1: memref<2x784xbf16, #tpu.memory_space<vmem>>, %arg2: memref<784x128xbf16, #tpu.memory_space<vmem>>, %arg3: memref<1x128xf32, #tpu.memory_space<vmem>>, %arg4: memref<128x128xbf16, #tpu.memory_space<vmem>>, %arg5: memref<1x128xf32, #tpu.memory_space<vmem>>, %arg6: memref<2x128xf32, #tpu.memory_space<vmem>>) attributes {dimension_semantics = [#tpu.dimension_semantics<parallel>], iteration_bounds = array<i64: 1>, scalar_prefetch = 0 : i64, scratch_operands = 0 : i64, tpu.core_type = #tpu.core_type<tc>, window_params = [{transform_indices = @transform_0, window_bounds = array<i64: 2, 784>}, {pipeline_mode = #tpu.pipeline_mode<synchronous>, transform_indices = @transform_1, window_bounds = array<i64: 784, 128>}, {pipeline_mode = #tpu.pipeline_mode<synchronous>, transform_indices = @transform_2, window_bounds = array<i64: 1, 128>}, {pipeline_mode = #tpu.pipeline_mode<synchronous>, transform_indices = @transform_3, window_bounds = array<i64: 128, 128>}, {pipeline_mode = #tpu.pipeline_mode<synchronous>, transform_indices = @transform_4, window_bounds = array<i64: 1, 128>}, {transform_indices = @transform_5, window_bounds = array<i64: 2, 128>}]} {
    %c0 = arith.constant 0 : index
    %c0_0 = arith.constant 0 : index
    %0 = vector.load %arg1[%c0, %c0_0] : memref<2x784xbf16, #tpu.memory_space<vmem>>, vector<2x784xbf16>
    %c0_1 = arith.constant 0 : index
    %c0_2 = arith.constant 0 : index
    %1 = vector.load %arg2[%c0_1, %c0_2] : memref<784x128xbf16, #tpu.memory_space<vmem>>, vector<784x128xbf16>
    %c0_3 = arith.constant 0 : index
    %c0_4 = arith.constant 0 : index
    %2 = vector.load %arg3[%c0_3, %c0_4] : memref<1x128xf32, #tpu.memory_space<vmem>>, vector<1x128xf32>
    %cst = arith.constant dense<0.000000e+00> : vector<2x128xf32>
    %3 = tpu.matmul %0, %1, %cst {dimension_numbers = #tpu.dot_dimension_numbers<[1], [0], [0], [1], [0, 0, 1, 1], [], []>} : vector<2x784xbf16>, vector<784x128xbf16>, vector<2x128xf32> -> vector<2x128xf32>
    %4 = vector.broadcast %2 : vector<1x128xf32> to vector<2x128xf32>
    %5 = arith.addf %3, %4 : vector<2x128xf32>
    %c0_5 = arith.constant 0 : index
    %c0_6 = arith.constant 0 : index
    %6 = vector.load %arg4[%c0_5, %c0_6] : memref<128x128xbf16, #tpu.memory_space<vmem>>, vector<128x128xbf16>
    %c0_7 = arith.constant 0 : index
    %c0_8 = arith.constant 0 : index
    %7 = vector.load %arg5[%c0_7, %c0_8] : memref<1x128xf32, #tpu.memory_space<vmem>>, vector<1x128xf32>
    %8 = arith.truncf %5 : vector<2x128xf32> to vector<2x128xbf16>
    %cst_9 = arith.constant dense<0.000000e+00> : vector<2x128xf32>
    %9 = tpu.matmul %8, %6, %cst_9 {dimension_numbers = #tpu.dot_dimension_numbers<[1], [0], [0], [1], [0, 0, 1, 1], [], []>} : vector<2x128xbf16>, vector<128x128xbf16>, vector<2x128xf32> -> vector<2x128xf32>
    %10 = vector.broadcast %7 : vector<1x128xf32> to vector<2x128xf32>
    %11 = arith.addf %9, %10 : vector<2x128xf32>
    %c0_10 = arith.constant 0 : index
    %c0_11 = arith.constant 0 : index
    %12 = vector.load %arg6[%c0_10, %c0_11] : memref<2x128xf32, #tpu.memory_space<vmem>>, vector<2x128xf32>
    tpu.vector_store %arg6[%c0_10, %c0_11], %11 {strides = array<i32>} : memref<2x128xf32, #tpu.memory_space<vmem>>, vector<2x128xf32>,
    return
  }
  func.func @transform_0(%arg0: i32) -> (i32, i32) {
    %c0_i32 = arith.constant 0 : i32
    %c0_i32_0 = arith.constant 0 : i32
    return %arg0, %c0_i32 : i32, i32
  }
  func.func @transform_1(%arg0: i32) -> (i32, i32) {
    %c0_i32 = arith.constant 0 : i32
    %c0_i32_0 = arith.constant 0 : i32
    %c0_i32_1 = arith.constant 0 : i32
    return %c0_i32, %c0_i32_0 : i32, i32
  }
  func.func @transform_2(%arg0: i32) -> (i32, i32) {
    %c0_i32 = arith.constant 0 : i32
    %c0_i32_0 = arith.constant 0 : i32
    %c0_i32_1 = arith.constant 0 : i32
    return %c0_i32, %c0_i32_0 : i32, i32
  }
  func.func @transform_3(%arg0: i32) -> (i32, i32) {
    %c0_i32 = arith.constant 0 : i32
    %c0_i32_0 = arith.constant 0 : i32
    %c0_i32_1 = arith.constant 0 : i32
    return %c0_i32, %c0_i32_0 : i32, i32
  }
  func.func @transform_4(%arg0: i32) -> (i32, i32) {
    %c0_i32 = arith.constant 0 : i32
    %c0_i32_0 = arith.constant 0 : i32
    %c0_i32_1 = arith.constant 0 : i32
    return %c0_i32, %c0_i32_0 : i32, i32
  }
  func.func @transform_5(%arg0: i32) -> (i32, i32) {
    %c0_i32 = arith.constant 0 : i32
    %c0_i32_0 = arith.constant 0 : i32
    return %arg0, %c0_i32 : i32, i32
  }
}

</mosaic_0001>

<bundles_post_ra>
// kernel: encoder_forward.1
= control target key start
LH: loop header
LB: loop body
LE: loop exit
PB: predicated region body
PF: predicated region fallthrough
CT: control target
= control target key end

     0   :  { %s1156_s0 = inlined_call_operand.vmem [shape: bf16[2,784], index: 0, kind: input, shape index: {}]   ;;  %s1157_s1 = inlined_call_operand.vmem [shape: bf16[784,128], index: 1, kind: input, shape index: {}]   ;;  %s1158_s2 = inlined_call_operand.vmem [shape: f32[1,128], index: 2, kind: input, shape index: {}]   ;;  %s1159_s3 = inlined_call_operand.vmem [shape: bf16[128,128], index: 3, kind: input, shape index: {}]   ;;  %s1160_s4 = inlined_call_operand.vmem [shape: f32[1,128], index: 4, kind: input, shape index: {}]   ;;  %s1161_s5 = inlined_call_operand.hbm [shape: f32[2,128], index: 5, kind: output, shape index: {}]  }
   0x1   :  { %v863_v0 = vld [vmem:[%s1157_s1 + $0x38] sm:$0xff]  ;;  %v862_v3 = vld [vmem:[%s1157_s1 + $0x30] sm:$0xff]  ;;  %v861_v8 = vld [vmem:[%s1157_s1 + $0x28] sm:$0xff] }
   0x2   :  { %v871_v1 = vld [vmem:[%s1157_s1 + $0x78] sm:$0xff]  ;;  %437 = vmatpush.bf16.msra.mxu0 %v863_v0  ;;  %v870_v4 = vld [vmem:[%s1157_s1 + $0x70] sm:$0xff]  ;;  %v869_v9 = vld [vmem:[%s1157_s1 + $0x68] sm:$0xff] }
   0x3   :  { %v879_v2 = vld [vmem:[%s1157_s1 + $0xb8] sm:$0xff]  ;;  %450 = vmatpush.bf16.msra.mxu1 %v871_v1  ;;  %v878_v5 = vld [vmem:[%s1157_s1 + $0xb0] sm:$0xff]  ;;  %v877_v10 = vld [vmem:[%s1157_s1 + $0xa8] sm:$0xff] }
   0x4   :  { %463 = vmatpush.bf16.msra.mxu2 %v879_v2  ;;  %v887_v6 = vld [vmem:[%s1157_s1 + $0xf8] sm:$0xff]  ;;  %v886_v7 = vld [vmem:[%s1157_s1 + $0xf0] sm:$0xff]  ;;  %v885_v11 = vld [vmem:[%s1157_s1 + $0xe8] sm:$0xff] }
   0x5   :  { %476 = vmatpush.bf16.msra.mxu3 %v887_v6  ;;  %v860_v12 = vld [vmem:[%s1157_s1 + $0x20] sm:$0xff]  ;;  %v859_v17 = vld [vmem:[%s1157_s1 + $0x18] sm:$0xff] }
   0x6   :  { %438 = vmatpush.bf16.msra.mxu0 %v862_v3  ;;  %v868_v13 = vld [vmem:[%s1157_s1 + $0x60] sm:$0xff]  ;;  %v867_v18 = vld [vmem:[%s1157_s1 + $0x58] sm:$0xff] }
   0x7   :  { %451 = vmatpush.bf16.msra.mxu1 %v870_v4  ;;  %v876_v14 = vld [vmem:[%s1157_s1 + $0xa0] sm:$0xff]  ;;  %v875_v19 = vld [vmem:[%s1157_s1 + $0x98] sm:$0xff] }
   0x8   :  { %464 = vmatpush.bf16.msra.mxu2 %v878_v5  ;;  %v22_v15 = vld [vmem:[%s1156_s0] sm:$0x7f] }
   0x9   :  { %477 = vmatpush.bf16.msra.mxu3 %v886_v7  ;;  %126 = vst [vmem:[#allocation1] ss:$9 sm:$0xff] %v22_v15  ;;  %v884_v16 = vld [vmem:[%s1157_s1 + $0xe0] sm:$0xff] }
   0xa   :  { %439 = vmatpush.bf16.msra.mxu0 %v861_v8 }
   0xb   :  { %452 = vmatpush.bf16.msra.mxu1 %v869_v9 }
   0xc   :  { %465 = vmatpush.bf16.msra.mxu2 %v877_v10 }
   0xd   :  { %478 = vmatpush.bf16.msra.mxu3 %v885_v11 }
   0xe   :  { %440 = vmatpush.bf16.msra.mxu0 %v860_v12 }
   0xf   :  { %453 = vmatpush.bf16.msra.mxu1 %v868_v13 }
  0x10   :  { %466 = vmatpush.bf16.msra.mxu2 %v876_v14 }
  0x11   :  { %10 = vsyncpa [#allocation3], 0  ;;  %479 = vmatpush.bf16.msra.mxu3 %v884_v16  ;;  %v883_v20 = vld [vmem:[%s1157_s1 + $0xd8] sm:$0xff]  ;;  %v858_v21 = vld [vmem:[%s1157_s1 + $0x10] sm:$0xff]  ;;  %vm434_vm0 = vcmask 130048   ;;  %s618_s10 = sshll.u32 %s1161_s5, 4  ;;  %s619_s10 = int_to_ptr.hbm [resolvable:$true] %s618_s10 }
  0x12   :  { %441 = vmatpush.bf16.msra.mxu0 %v859_v17  ;;  %v866_v22 = vld [vmem:[%s1157_s1 + $0x50] sm:$0xff]  ;;  %v857_v25 = vld [vmem:[%s1157_s1 + $0x8] sm:$0xff]  ;;  %v856_v29 = vld [vmem:[%s1157_s1] sm:$0xff] }
  0x13   :  { %454 = vmatpush.bf16.msra.mxu1 %v867_v18  ;;  %v874_v23 = vld [vmem:[%s1157_s1 + $0x90] sm:$0xff]  ;;  %v865_v26 = vld [vmem:[%s1157_s1 + $0x48] sm:$0xff]  ;;  %v864_v30 = vld [vmem:[%s1157_s1 + $0x40] sm:$0xff] }
  0x14   :  { %467 = vmatpush.bf16.msra.mxu2 %v875_v19  ;;  %v882_v24 = vld [vmem:[%s1157_s1 + $0xd0] sm:$0xff]  ;;  %v873_v27 = vld [vmem:[%s1157_s1 + $0x88] sm:$0xff]  ;;  %v895_v31 = vld [vmem:[%s1157_s1 + $0x138] sm:$0xff] }
  0x15   :  { %480 = vmatpush.bf16.msra.mxu3 %v883_v20  ;;  %v881_v28 = vld [vmem:[%s1157_s1 + $0xc8] sm:$0xff]  ;;  %v903_v32 = vld [vmem:[%s1157_s1 + $0x178] sm:$0xff]  ;;  %v872_v33 = vld [vmem:[%s1157_s1 + $0x80] sm:$0xff] }
  0x16   :  { %442 = vmatpush.bf16.msra.mxu0 %v858_v21  ;;  %v880_v34 = vld [vmem:[%s1157_s1 + $0xc0] sm:$0xff]  ;;  %v128_v36 = vld [vmem:[#allocation1 + $0x9] sm:$0xff]  ;;  %v129_v40 = vld [vmem:[#allocation1 + $0x12] sm:$0xff] }
  0x17   :  { %455 = vmatpush.bf16.msra.mxu1 %v866_v22  ;;  %v127_v35 = vld [vmem:[#allocation1] sm:$0xff]  ;;  %v894_v38 = vld [vmem:[%s1157_s1 + $0x130] sm:$0xff]  ;;  %v893_v42 = vld [vmem:[%s1157_s1 + $0x128] sm:$0xff] }
  0x18   :  { %468 = vmatpush.bf16.msra.mxu2 %v874_v23  ;;  %v904_v37 = vld [vmem:[%s1157_s1 + $0x180] sm:$0xff]  ;;  %v902_v39 = vld [vmem:[%s1157_s1 + $0x170] sm:$0xff]  ;;  %v901_v43 = vld [vmem:[%s1157_s1 + $0x168] sm:$0xff] }
  0x19   :  { %481 = vmatpush.bf16.msra.mxu3 %v882_v24  ;;  %v130_v41 = vld [vmem:[#allocation1 + $0x1b] sm:$0xff]  ;;  %v890_v48 = vld [vmem:[%s1157_s1 + $0x110] sm:$0xff]  ;;  %v889_v51 = vld [vmem:[%s1157_s1 + $0x108] sm:$0xff] }
  0x1a   :  { %443 = vmatpush.bf16.msra.mxu0 %v857_v25  ;;  %v892_v44 = vld [vmem:[%s1157_s1 + $0x120] sm:$0xff]  ;;  %v891_v46 = vld [vmem:[%s1157_s1 + $0x118] sm:$0xff]  ;;  %v898_v49 = vld [vmem:[%s1157_s1 + $0x150] sm:$0xff] }
  0x1b   :  { %456 = vmatpush.bf16.msra.mxu1 %v865_v26  ;;  %v900_v45 = vld [vmem:[%s1157_s1 + $0x160] sm:$0xff]  ;;  %v899_v47 = vld [vmem:[%s1157_s1 + $0x158] sm:$0xff]  ;;  %v897_v52 = vld [vmem:[%s1157_s1 + $0x148] sm:$0xff] }
  0x1c   :  { %469 = vmatpush.bf16.msra.mxu2 %v873_v27  ;;  %v133_v50 = vld [vmem:[#allocation1 + $0x36] sm:$0xff]  ;;  %v888_v53 = vld [vmem:[%s1157_s1 + $0x100] sm:$0xff]  ;;  %v132_v56 = vld [vmem:[#allocation1 + $0x2d] sm:$0xff] }
  0x1d   :  { %482 = vmatpush.bf16.msra.mxu3 %v881_v28  ;;  %v896_v54 = vld [vmem:[%s1157_s1 + $0x140] sm:$0xff]  ;;  %v912_v57 = vld [vmem:[%s1159_s3 + $0x38] sm:$0xff]  ;;  %v911_v58 = vld [vmem:[%s1159_s3 + $0x30] sm:$0xff] }
  0x1e   :  { %444 = vmatpush.bf16.msra.mxu0 %v856_v29  ;;  %v131_v55 = vld [vmem:[#allocation1 + $0x24] sm:$0xff]  ;;  %v908_v61 = vld [vmem:[%s1159_s3 + $0x18] sm:$0xff]  ;;  %v907_v62 = vld [vmem:[%s1159_s3 + $0x10] sm:$0xff] }
  0x1f   :  { %457 = vmatpush.bf16.msra.mxu1 %v864_v30  ;;  %v910_v59 = vld [vmem:[%s1159_s3 + $0x28] sm:$0xff]  ;;  %v909_v60 = vld [vmem:[%s1159_s3 + $0x20] sm:$0xff] }
  0x20   :  { %470 = vmatpush.bf16.msra.mxu2 %v872_v33  ;;  %v906_v63 = vld [vmem:[%s1159_s3 + $0x8] sm:$0xff]  ;;  %v905_v2 = vld [vmem:[%s1159_s3] sm:$0xff] }
  0x21   :  { %445 = vmatmul.bf16.vlgmr.msra.gmra.mxu0 %v127_v35  ;;  %483 = vmatpush.bf16.msra.mxu3 %v880_v34  ;;  %v914_v7 = vld [vmem:[%s1158_s2] ss:$0 sm:$0xff]  ;;  %s942_s2 = smov [#allocation2]  }
  0x22   :  { %489 = vmatpush.bf16.msrb.mxu0 %v895_v31  ;;  %458 = vmatmul.bf16.vlgmr.msra.gmra.mxu1 %v128_v36  ;;  %v915_v24 = vld [vmem:[%s1160_s4] ss:$0 sm:$0xff]  ;;  %s616_s0 = sshll.u32 %s942_s2, 4  ;;  %s617_s0 = int_to_ptr.vmem [resolvable:$true] %s616_s0 }
  0x23   :  { %502 = vmatpush.bf16.msrb.mxu1 %v903_v32  ;;  %471 = vmatmul.bf16.vlgmr.msra.gmra.mxu2 %v129_v40 }
  0x24   :  { %522 = vmatpush.bf16.msrb.mxu2 %v904_v37  ;;  %484 = vmatmul.bf16.vlgmr.msra.gmra.mxu3 %v130_v41 }
  0x25   :  { %597 = vmatpush.bf16.msrb.mxu3 %v912_v57 }
  0x26   :  { %490 = vmatpush.bf16.msrb.mxu0 %v894_v38 }
  0x27   :  { %503 = vmatpush.bf16.msrb.mxu1 %v902_v39 }
  0x29   :  { %598 = vmatpush.bf16.msrb.mxu3 %v911_v58 }
  0x2a   :  { %491 = vmatpush.bf16.msrb.mxu0 %v893_v42 }
  0x2b   :  { %504 = vmatpush.bf16.msrb.mxu1 %v901_v43 }
  0x2d   :  { %599 = vmatpush.bf16.msrb.mxu3 %v910_v59 }
  0x2e   :  { %492 = vmatpush.bf16.msrb.mxu0 %v892_v44 }
  0x2f   :  { %505 = vmatpush.bf16.msrb.mxu1 %v900_v45 }
  0x31   :  { %600 = vmatpush.bf16.msrb.mxu3 %v909_v60 }
  0x32   :  { %493 = vmatpush.bf16.msrb.mxu0 %v891_v46 }
  0x33   :  { %506 = vmatpush.bf16.msrb.mxu1 %v899_v47  ;;  %823 = vmatmul.msk.bf16.vlgmr.msrb.gmra.mxu2 %vm434_vm0, %v133_v50 }
  0x35   :  { %601 = vmatpush.bf16.msrb.mxu3 %v908_v61 }
  0x36   :  { %494 = vmatpush.bf16.msrb.mxu0 %v890_v48 }
  0x37   :  { %507 = vmatpush.bf16.msrb.mxu1 %v898_v49 }
  0x39   :  { %602 = vmatpush.bf16.msrb.mxu3 %v907_v62 }
  0x3a   :  { %495 = vmatpush.bf16.msrb.mxu0 %v889_v51 }
  0x3b   :  { %508 = vmatpush.bf16.msrb.mxu1 %v897_v52 }
  0x3d   :  { %603 = vmatpush.bf16.msrb.mxu3 %v906_v63 }
  0x3e   :  { %496 = vmatpush.bf16.msrb.mxu0 %v888_v53 }
  0x3f   :  { %509 = vmatpush.bf16.msrb.mxu1 %v896_v54 }
  0x41   :  { %497 = vmatmul.bf16.vlgmr.msrb.gmra.mxu0 %v131_v55  ;;  %604 = vmatpush.bf16.msrb.mxu3 %v905_v2 }
  0x42   :  { %510 = vmatmul.bf16.vlgmr.msrb.gmra.mxu1 %v132_v56 }
  0x9e   :  { %v446_v0 = vpop.f32.mrf.mxu0 }
  0x9f   :  { %v459_v1 = vpop.f32.mrf.mxu1  ;;  %v447_v8 = vadd.f32 %v914_v7, %v446_v0 }
  0xa1   :  { %v460_v11 = vadd.f32 %v459_v1, %v447_v8 }
  0xa6   :  { %v448_v3 = vpop.f32.mrf.mxu0  ;;  %v472_v5 = vpop.f32.mrf.mxu2 }
  0xa7   :  { %v461_v4 = vpop.f32.mrf.mxu1  ;;  %v485_v6 = vpop.f32.mrf.mxu3  ;;  %v473_v12 = vadd.f32 %v472_v5, %v460_v11 }
  0xa9   :  { %v486_v14 = vadd.f32 %v485_v6, %v473_v12 }
  0xae   :  { %v474_v9 = vpop.f32.mrf.mxu2 }
  0xaf   :  { %v487_v10 = vpop.f32.mrf.mxu3 }
  0xb6   :  { %v524_v13 = vpop.f32.mrf.mxu2 }
  0xbe   :  { %v498_v15 = vpop.f32.mrf.mxu0  ;;  %v526_v19 = vpop.f32.mrf.mxu2 }
  0xbf   :  { %v511_v16 = vpop.f32.mrf.mxu1  ;;  %v499_v17 = vadd.f32 %v498_v15, %v486_v14 }
  0xc1   :  { %v512_v18 = vadd.f32 %v511_v16, %v499_v17 }
  0xc3   :  { %v525_v20 = vadd.f32 %v524_v13, %v512_v18 }
  0xc5   :  { %v545_v21 = vpack.c.bf16 %v525_v20, %v525_v20 }
  0xc6   :  { %v500_v22 = vpop.f32.mrf.mxu0 }
  0xc7   :  { %v513_v23 = vpop.f32.mrf.mxu1  ;;  %605 = vmatmul.bf16.vlgmr.msrb.gmra.mxu3 %v545_v21 }
 0x14a   :  { %v606_v25 = vpop.f32.mrf.mxu3 }
 0x14b   :  { %v607_v26 = vadd.f32 %v915_v24, %v606_v25 }
 0x14d   :  { %610 = vst [vmem:[#allocation2] sm:$0x3] %v607_v26 }
 0x14e   :  { %621 = dma.vmem_to_hbm [thread:$0]  %s617_s0, 32, %s619_s10, [#allocation3]  }
 0x152   :  { %v608_v27 = vpop.f32.mrf.mxu3 }
 0x153   :  { %940 = dma.done.wait [#allocation3], 32  }
 0x154   :  { %941 = vsyncadd [#allocation3], 4294967264 }
 0x155   :  { %626 = vsyncpa [#allocation3], 1 }

</bundles_post_ra>
